<compile_context>
chip_gen: v6e
topology: v6e:2x2x1
jax: 0.10.0
libtpu: 0.0.40
codegen_flags: <defaults>
</compile_context>

<pallas_src>
import jax
import jax.numpy as jnp
from jax.experimental import pallas as pl
from jax.experimental.pallas import tpu as pltpu

IN_FEATURES = 78
HIDDEN = 10
OUT_FEATURES = 3


def _round_up(n, m):
    return ((n + m - 1) // m) * m


def bpnet_kernel(x_ref, w1_ref, b1_ref, w2_ref, b2_ref, o_ref):
    # One batch tile per grid step; both matmuls + ReLU stay inside the step so
    # the MXU epilogue is hidden under the pipelined x DMA of the next tile.
    h = jnp.dot(x_ref[...], w1_ref[...], preferred_element_type=jnp.float32)  # (TB, 10)
    h = jnp.maximum(h + b1_ref[...], 0.0)                                     # ReLU on VPU
    y = jnp.dot(h, w2_ref[...], preferred_element_type=jnp.float32)           # (TB, 3)
    o_ref[...] = y + b2_ref[...]


def bpnet_forward(x, w1, b1, w2, b2, *, tb=1024):
    """x: (B, 78) any float dtype; returns (B, 3) float32.

    tb: batch tile (rows per grid step). 512-4096 reaches ~85%+ of the HBM
    roofline; clamped down for small batches and rounded to a multiple of 8.
    """
    B = x.shape[0]
    x = x.astype(jnp.float32)  # matches PyTorch x.float()

    # Tile size: multiple of 8 (sublane), no larger than the (padded) batch.
    tb = max(8, min(_round_up(tb, 8), _round_up(B, 8)))
    b_pad = _round_up(B, tb)
    if b_pad != B:
        # Zero-pad the tail tile; padded rows are discarded after the call.
        x = jnp.pad(x, ((0, b_pad - B), (0, 0)))

    grid = (b_pad // tb,)

    flops = 2 * b_pad * (IN_FEATURES * HIDDEN + HIDDEN * OUT_FEATURES)
    bytes_accessed = (
        b_pad * (IN_FEATURES + OUT_FEATURES) * 4
        + (IN_FEATURES * HIDDEN + HIDDEN + HIDDEN * OUT_FEATURES + OUT_FEATURES) * 4
    )

    out = pl.pallas_call(
        bpnet_kernel,
        out_shape=jax.ShapeDtypeStruct((b_pad, OUT_FEATURES), jnp.float32),
        grid=grid,
        in_specs=[
            # Streamed batch tiles of x (auto double-buffered by Pallas).
            pl.BlockSpec((tb, IN_FEATURES), lambda i: (i, 0)),
            # Tiny weights/biases: constant block index -> resident in VMEM.
            pl.BlockSpec((IN_FEATURES, HIDDEN), lambda i: (0, 0)),
            pl.BlockSpec((1, HIDDEN), lambda i: (0, 0)),
            pl.BlockSpec((HIDDEN, OUT_FEATURES), lambda i: (0, 0)),
            pl.BlockSpec((1, OUT_FEATURES), lambda i: (0, 0)),
        ],
        out_specs=pl.BlockSpec((tb, OUT_FEATURES), lambda i: (i, 0)),
        compiler_params=pltpu.CompilerParams(
            dimension_semantics=("parallel",),  # lets v7x split tiles across 2 TCs
        ),
        cost_estimate=pl.CostEstimate(
            flops=flops, transcendentals=0, bytes_accessed=bytes_accessed
        ),
    )(x, w1, b1, w2, b2)

    return out[:B]


def init_params(key):
    """Deterministic parameter init (same shapes as the PyTorch module)."""
    k1, k2, k3, k4 = jax.random.split(key, 4)
    # Stored as (in, out) so the kernel does x @ W directly.
    w1 = jax.random.normal(k1, (IN_FEATURES, HIDDEN), jnp.float32) * 0.1
    b1 = jax.random.normal(k2, (1, HIDDEN), jnp.float32) * 0.1
    w2 = jax.random.normal(k3, (HIDDEN, OUT_FEATURES), jnp.float32) * 0.1
    b2 = jax.random.normal(k4, (1, OUT_FEATURES), jnp.float32) * 0.1
    return w1, b1, w2, b2


if __name__ == "__main__":
    key = jax.random.PRNGKey(0)
    kx, kp = jax.random.split(key)

    # Small but non-trivial: B=300 with tb=128 -> grid of 3 tiles, ragged tail
    # (exercises the zero-pad + slice path and the constant weight index maps).
    B = 300
    x = jax.random.normal(kx, (B, IN_FEATURES), jnp.float32)
    w1, b1, w2, b2 = init_params(kp)

    out = bpnet_forward(x, w1, b1, w2, b2, tb=128)
    out = jax.block_until_ready(out)

    # Cross-check against plain-JAX reference for correctness.
    ref = jnp.maximum(x @ w1 + b1, 0.0) @ w2 + b2
    assert out.shape == (B, OUT_FEATURES)
    assert jnp.allclose(out, ref, atol=1e-5, rtol=1e-5)

    # Also sanity-check a batch smaller than one tile (tb clamps to 8 rows).
    out_small = jax.block_until_ready(bpnet_forward(x[:8], w1, b1, w2, b2))
    ref_small = jnp.maximum(x[:8] @ w1 + b1, 0.0) @ w2 + b2
    assert jnp.allclose(out_small, ref_small, atol=1e-5, rtol=1e-5)

    print("KERNEL_OK")
</pallas_src>

<mosaic_0001>
module attributes {stable_mosaic.version = 11 : i64} {
  func.func @bpnet_kernel(%arg0: i32, %arg1: memref<128x78xf32, #tpu.memory_space<vmem>>, %arg2: memref<78x10xf32, #tpu.memory_space<vmem>>, %arg3: memref<1x10xf32, #tpu.memory_space<vmem>>, %arg4: memref<10x3xf32, #tpu.memory_space<vmem>>, %arg5: memref<1x3xf32, #tpu.memory_space<vmem>>, %arg6: memref<128x3xf32, #tpu.memory_space<vmem>>) attributes {dimension_semantics = [#tpu.dimension_semantics<parallel>], iteration_bounds = array<i64: 3>, scalar_prefetch = 0 : i64, scratch_operands = 0 : i64, tpu.core_type = #tpu.core_type<tc>, window_params = [{transform_indices = @transform_0, window_bounds = array<i64: 128, 78>}, {pipeline_mode = #tpu.pipeline_mode<synchronous>, transform_indices = @transform_1, window_bounds = array<i64: 78, 10>}, {pipeline_mode = #tpu.pipeline_mode<synchronous>, transform_indices = @transform_2, window_bounds = array<i64: 1, 10>}, {pipeline_mode = #tpu.pipeline_mode<synchronous>, transform_indices = @transform_3, window_bounds = array<i64: 10, 3>}, {pipeline_mode = #tpu.pipeline_mode<synchronous>, transform_indices = @transform_4, window_bounds = array<i64: 1, 3>}, {transform_indices = @transform_5, window_bounds = array<i64: 128, 3>}]} {
    %c0 = arith.constant 0 : index
    %c0_0 = arith.constant 0 : index
    %0 = vector.load %arg1[%c0, %c0_0] : memref<128x78xf32, #tpu.memory_space<vmem>>, vector<128x78xf32>
    %c0_1 = arith.constant 0 : index
    %c0_2 = arith.constant 0 : index
    %1 = vector.load %arg2[%c0_1, %c0_2] : memref<78x10xf32, #tpu.memory_space<vmem>>, vector<78x10xf32>
    %cst = arith.constant dense<0.000000e+00> : vector<128x10xf32>
    %2 = tpu.matmul %0, %1, %cst {dimension_numbers = #tpu.dot_dimension_numbers<[1], [0], [0], [1], [0, 0, 1, 1], [], []>} : vector<128x78xf32>, vector<78x10xf32>, vector<128x10xf32> -> vector<128x10xf32>
    %c0_3 = arith.constant 0 : index
    %c0_4 = arith.constant 0 : index
    %3 = vector.load %arg3[%c0_3, %c0_4] : memref<1x10xf32, #tpu.memory_space<vmem>>, vector<1x10xf32>
    %4 = vector.broadcast %3 : vector<1x10xf32> to vector<128x10xf32>
    %5 = arith.addf %2, %4 : vector<128x10xf32>
    %cst_5 = arith.constant 0.000000e+00 : f32
    %6 = vector.broadcast %cst_5 : f32 to vector<128x10xf32>
    %7 = arith.maximumf %5, %6 : vector<128x10xf32>
    %c0_6 = arith.constant 0 : index
    %c0_7 = arith.constant 0 : index
    %8 = vector.load %arg4[%c0_6, %c0_7] : memref<10x3xf32, #tpu.memory_space<vmem>>, vector<10x3xf32>
    %cst_8 = arith.constant dense<0.000000e+00> : vector<128x3xf32>
    %9 = tpu.matmul %7, %8, %cst_8 {dimension_numbers = #tpu.dot_dimension_numbers<[1], [0], [0], [1], [0, 0, 1, 1], [], []>} : vector<128x10xf32>, vector<10x3xf32>, vector<128x3xf32> -> vector<128x3xf32>
    %c0_9 = arith.constant 0 : index
    %c0_10 = arith.constant 0 : index
    %10 = vector.load %arg5[%c0_9, %c0_10] : memref<1x3xf32, #tpu.memory_space<vmem>>, vector<1x3xf32>
    %11 = vector.broadcast %10 : vector<1x3xf32> to vector<128x3xf32>
    %12 = arith.addf %9, %11 : vector<128x3xf32>
    %c0_11 = arith.constant 0 : index
    %c0_12 = arith.constant 0 : index
    %13 = vector.load %arg6[%c0_11, %c0_12] : memref<128x3xf32, #tpu.memory_space<vmem>>, vector<128x3xf32>
    tpu.vector_store %arg6[%c0_11, %c0_12], %12 {strides = array<i32>} : memref<128x3xf32, #tpu.memory_space<vmem>>, vector<128x3xf32>,
    return
  }
  func.func @transform_0(%arg0: i32) -> (i32, i32) {
    %c0_i32 = arith.constant 0 : i32
    %c0_i32_0 = arith.constant 0 : i32
    return %arg0, %c0_i32 : i32, i32
  }
  func.func @transform_1(%arg0: i32) -> (i32, i32) {
    %c0_i32 = arith.constant 0 : i32
    %c0_i32_0 = arith.constant 0 : i32
    %c0_i32_1 = arith.constant 0 : i32
    return %c0_i32, %c0_i32_0 : i32, i32
  }
  func.func @transform_2(%arg0: i32) -> (i32, i32) {
    %c0_i32 = arith.constant 0 : i32
    %c0_i32_0 = arith.constant 0 : i32
    %c0_i32_1 = arith.constant 0 : i32
    return %c0_i32, %c0_i32_0 : i32, i32
  }
  func.func @transform_3(%arg0: i32) -> (i32, i32) {
    %c0_i32 = arith.constant 0 : i32
    %c0_i32_0 = arith.constant 0 : i32
    %c0_i32_1 = arith.constant 0 : i32
    return %c0_i32, %c0_i32_0 : i32, i32
  }
  func.func @transform_4(%arg0: i32) -> (i32, i32) {
    %c0_i32 = arith.constant 0 : i32
    %c0_i32_0 = arith.constant 0 : i32
    %c0_i32_1 = arith.constant 0 : i32
    return %c0_i32, %c0_i32_0 : i32, i32
  }
  func.func @transform_5(%arg0: i32) -> (i32, i32) {
    %c0_i32 = arith.constant 0 : i32
    %c0_i32_0 = arith.constant 0 : i32
    return %arg0, %c0_i32 : i32, i32
  }
}

</mosaic_0001>

<bundles_post_ra>
// kernel: tpu_custom_call.1
= control target key start
LH: loop header
LB: loop body
LE: loop exit
PB: predicated region body
PF: predicated region fallthrough
CT: control target
= control target key end

     0   :  { %s964_s18 = smov 0   ;;  %s1114_s0 = inlined_call_operand.vmem [shape: f32[384,78], index: 0, kind: input, shape index: {}]   ;;  %s1115_s1 = inlined_call_operand.vmem [shape: f32[78,10], index: 1, kind: input, shape index: {}]   ;;  %s1116_s2 = inlined_call_operand.vmem [shape: f32[1,10], index: 2, kind: input, shape index: {}]   ;;  %s1117_s3 = inlined_call_operand.vmem [shape: f32[10,3], index: 3, kind: input, shape index: {}]   ;;  %s1118_s4 = inlined_call_operand.vmem [shape: f32[1,3], index: 4, kind: input, shape index: {}]   ;;  %s1119_s5 = inlined_call_operand.vmem [shape: f32[384,3], index: 5, kind: output, shape index: {}]  }
   0x1 LB: > { %s755_s19 = sadd.s32 4294967295, %s932_s18   ;;  %p759_p0 = scmp.ge.s32.totalorder %s932_s18, 1  ;;  %s932_s18 = sphi %s964_s18, %s15_s18  }
   0x2   : > { %p188_p1 = scmp.lt.s32.totalorder %s932_s18, 4 }
   0x4   : > { %p189_p2 = pnand %p759_p0, %p188_p1 }
   0x5   : > { %s760_s24 = sshll.u32 (!%p189_p2), %s755_s19, 4 }
   0x6   : > { %192 = sbr.rel (%p189_p2) target bundleno = 458 (0x1ca), region = 40  ;;  %p217_p3 = scmp.lt.s32.totalorder (!%p189_p2), %s760_s24, 47 }
   0xb   : > { %v253_v0 = vld [vmem:[%s1115_s1 + $0x48] sm:$0x3f]  ;;  %vm310_vm0 = vcmask 1045504   ;;  %v252_v1 = vld [vmem:[%s1115_s1 + $0x40] sm:$0xff]  ;;  %v251_v2 = vld [vmem:[%s1115_s1 + $0x38] sm:$0xff]  ;;  %s1121_s24 = smov (!%p217_p3, %s760_s24), 47 }
   0xc   : > { %846 = vmatprep.subr.msk.mxu0 %vm310_vm0, %v253_v0  ;;  %v250_v3 = vld [vmem:[%s1115_s1 + $0x30] sm:$0xff]  ;;  %s761_s29 = sshll.u32 %s1121_s24, 3  ;;  %vm261_vm1 = vcmask 637952   ;;  %v249_v4 = vld [vmem:[%s1115_s1 + $0x28] sm:$0xff]  ;;  %v248_v6 = vld [vmem:[%s1115_s1 + $0x20] sm:$0xff]  ;;  %vm533_vm2 = vcmask 1041408  }
   0xd   : > { %847 = vmatpush3.msk.msra.mxu0 %vm310_vm0, %v253_v0  ;;  %s995_s9 = scalar_lea.vmem %s1114_s0, %s761_s29  ;;  %v247_v7 = vld [vmem:[%s1115_s1 + $0x18] sm:$0xff]  ;;  %v246_v8 = vld [vmem:[%s1115_s1 + $0x10] sm:$0xff]  ;;  %v245_v9 = vld [vmem:[%s1115_s1 + $0x8] sm:$0xff]  ;;  %vm484_vm3 = vcmask 80896   ;;  %s1077_s8 = scalar_lea.vmem %s1119_s5, %s761_s29  ;;  %vm682_vm4 = vcmask 23552  }
   0xe   : > { %848 = vmatprep.subr.mxu0 %v252_v1  ;;  %v228_v5 = vld [vmem:[%s995_s9] sm:$0xff]  ;;  %v229_v11 = vld [vmem:[%s995_s9 + $0x8] sm:$0xff]  ;;  %v230_v12 = vld [vmem:[%s995_s9 + $0x10] sm:$0xff] }
   0xf   : > { %849 = vmatpush3.msra.mxu0 %v252_v1  ;;  %866 = vmatprep.mubr.msk.f32.mxu0 %vm261_vm1, %v228_v5  ;;  %v244_v10 = vld [vmem:[%s1115_s1] sm:$0xff]  ;;  %v231_v13 = vld [vmem:[%s995_s9 + $0x18] sm:$0xff]  ;;  %v233_v15 = vld [vmem:[%s995_s9 + $0x28] sm:$0xff] }
  0x10   : > { %850 = vmatprep.subr.mxu0 %v251_v2  ;;  %v232_v14 = vld [vmem:[%s995_s9 + $0x20] sm:$0xff]  ;;  %v234_v16 = vld [vmem:[%s995_s9 + $0x30] sm:$0xff]  ;;  %v235_v17 = vld [vmem:[%s995_s9 + $0x38] sm:$0xff] }
  0x11   : > { %851 = vmatpush3.msra.mxu0 %v251_v2  ;;  %v236_v18 = vld [vmem:[%s995_s9 + $0x40] sm:$0xff]  ;;  %v237_v19 = vld [vmem:[%s995_s9 + $0x48] sm:$0xff]  ;;  %v238_v20 = vld [vmem:[%s995_s9 + $0x50] sm:$0xff] }
  0x12   : > { %852 = vmatprep.subr.mxu0 %v250_v3  ;;  %v239_v21 = vld [vmem:[%s995_s9 + $0x58] sm:$0xff]  ;;  %v240_v22 = vld [vmem:[%s995_s9 + $0x60] sm:$0xff]  ;;  %v241_v23 = vld [vmem:[%s995_s9 + $0x68] sm:$0xff] }
  0x13   : > { %853 = vmatpush3.msra.mxu0 %v250_v3  ;;  %v242_v24 = vld [vmem:[%s995_s9 + $0x70] sm:$0xff]  ;;  %v243_v25 = vld [vmem:[%s995_s9 + $0x78] sm:$0xff]  ;;  %v476_v26 = vld [vmem:[%s1117_s3 + $0x8] sm:$0x3] }
  0x14   : > { %854 = vmatprep.subr.mxu0 %v249_v4  ;;  %890 = vmatprep.subr.msk.mxu1 %vm533_vm2, %v476_v26  ;;  %v475_v27 = vld [vmem:[%s1117_s3] sm:$0xff] }
  0x15   : > { %855 = vmatpush3.msra.mxu0 %v249_v4  ;;  %891 = vmatpush3.msk.msra.mxu1 %vm533_vm2, %v476_v26  ;;  %v764_v28 = vld [vmem:[%s1116_s2] ss:$0 sm:$0xff] }
  0x16   : > { %856 = vmatprep.subr.mxu0 %v248_v6  ;;  %892 = vmatprep.subr.mxu1 %v475_v27 }
  0x17   : > { %857 = vmatpush3.msra.mxu0 %v248_v6  ;;  %893 = vmatpush3.msra.mxu1 %v475_v27 }
  0x18   : > { %858 = vmatprep.subr.mxu0 %v247_v7 }
  0x19   : > { %859 = vmatpush3.msra.mxu0 %v247_v7 }
  0x1a   : > { %860 = vmatprep.subr.mxu0 %v246_v8 }
  0x1b   : > { %861 = vmatpush3.msra.mxu0 %v246_v8 }
  0x1c   : > { %862 = vmatprep.subr.mxu0 %v245_v9 }
  0x1d   : > { %863 = vmatpush3.msra.mxu0 %v245_v9 }
  0x1e   : > { %864 = vmatprep.subr.mxu0 %v244_v10 }
  0x1f   : > { %865 = vmatpush3.msra.mxu0 %v244_v10 }
  0x20   : > { %867 = vmatmul.mubr.msk.f32.vlgmr.msra.gmra.mxu0 %vm261_vm1, %v229_v11 }
  0x21   : > { %869 = vmatprep.mubr.msk.f32.mxu0 %vm261_vm1, %v230_v12 }
  0x24   : > { %870 = vmatmul.mubr.msk.f32.gmra.mxu0 %vm261_vm1, %v231_v13  ;;  %v782_v13 = vld [vmem:[%s1118_s4] ss:$0 sm:$0xff] }
  0x25   : > { %872 = vmatprep.mubr.msk.f32.mxu0 %vm261_vm1, %v232_v14 }
  0x28   : > { %873 = vmatmul.mubr.msk.f32.gmra.mxu0 %vm261_vm1, %v233_v15 }
  0x29   : > { %875 = vmatprep.mubr.msk.f32.mxu0 %vm261_vm1, %v234_v16 }
  0x2c   : > { %876 = vmatmul.mubr.msk.f32.gmra.mxu0 %vm261_vm1, %v235_v17 }
  0x2d   : > { %878 = vmatprep.mubr.msk.f32.mxu0 %vm261_vm1, %v236_v18 }
  0x30   : > { %879 = vmatmul.mubr.msk.f32.gmra.mxu0 %vm261_vm1, %v237_v19 }
  0x31   : > { %881 = vmatprep.mubr.msk.f32.mxu0 %vm261_vm1, %v238_v20 }
  0x34   : > { %882 = vmatmul.mubr.msk.f32.gmra.mxu0 %vm261_vm1, %v239_v21 }
  0x35   : > { %884 = vmatprep.mubr.msk.f32.mxu0 %vm261_vm1, %v240_v22 }
  0x38   : > { %885 = vmatmul.mubr.msk.f32.gmra.mxu0 %vm261_vm1, %v241_v23 }
  0x39   : > { %887 = vmatprep.mubr.msk.f32.mxu0 %vm261_vm1, %v242_v24 }
  0x3c   : > { %888 = vmatmul.mubr.msk.f32.gmra.mxu0 %vm261_vm1, %v243_v25 }
  0xe0   : > { %v868_v29 = vpop.f32.mrf.mxu0 }
  0xe1   : > { %v386_v30 = vadd.f32 %v868_v29, %v764_v28 }
  0xe2   : > { %v380_v31 = vpop.f32.mrf.mxu0 }
  0xe3   : > { %v381_v32 = vadd.f32 %v764_v28, %v380_v31  ;;  %v460_v35 = vmax.f32 %v386_v30, 0.0 }
  0xe4   : > { %v871_v33 = vpop.f32.mrf.mxu0 }
  0xe5   : > { %v459_v34 = vmax.f32 %v381_v32, 0.0  ;;  %v396_v36 = vadd.f32 %v871_v33, %v764_v28 }
  0xe6   : > { %v390_v37 = vpop.f32.mrf.mxu0 }
  0xe7   : > { %v391_v38 = vadd.f32 %v764_v28, %v390_v37  ;;  %894 = vmatprep.mubr.msk.f32.mxu1 %vm484_vm3, %v459_v34  ;;  %v462_v41 = vmax.f32 %v396_v36, 0.0 }
  0xe8   : > { %v874_v39 = vpop.f32.mrf.mxu0  ;;  %895 = vmatmul.mubr.msk.f32.vlgmr.msra.gmra.mxu1 %vm484_vm3, %v460_v35 }
  0xe9   : > { %v461_v40 = vmax.f32 %v391_v38, 0.0  ;;  %v406_v42 = vadd.f32 %v874_v39, %v764_v28 }
  0xea   : > { %v400_v43 = vpop.f32.mrf.mxu0 }
  0xeb   : > { %v401_v44 = vadd.f32 %v764_v28, %v400_v43  ;;  %897 = vmatprep.mubr.msk.f32.mxu1 %vm484_vm3, %v461_v40  ;;  %v464_v47 = vmax.f32 %v406_v42, 0.0 }
  0xec   : > { %v877_v45 = vpop.f32.mrf.mxu0  ;;  %898 = vmatmul.mubr.msk.f32.gmra.mxu1 %vm484_vm3, %v462_v41 }
  0xed   : > { %v463_v46 = vmax.f32 %v401_v44, 0.0  ;;  %v416_v48 = vadd.f32 %v877_v45, %v764_v28 }
  0xee   : > { %v410_v49 = vpop.f32.mrf.mxu0 }
  0xef   : > { %v411_v50 = vadd.f32 %v764_v28, %v410_v49  ;;  %900 = vmatprep.mubr.msk.f32.mxu1 %vm484_vm3, %v463_v46  ;;  %v466_v53 = vmax.f32 %v416_v48, 0.0 }
  0xf0   : > { %v880_v51 = vpop.f32.mrf.mxu0  ;;  %901 = vmatmul.mubr.msk.f32.gmra.mxu1 %vm484_vm3, %v464_v47 }
  0xf1   : > { %v465_v52 = vmax.f32 %v411_v50, 0.0  ;;  %v426_v54 = vadd.f32 %v880_v51, %v764_v28 }
  0xf2   : > { %v420_v55 = vpop.f32.mrf.mxu0 }
  0xf3   : > { %v421_v56 = vadd.f32 %v764_v28, %v420_v55  ;;  %903 = vmatprep.mubr.msk.f32.mxu1 %vm484_vm3, %v465_v52  ;;  %v468_v59 = vmax.f32 %v426_v54, 0.0 }
  0xf4   : > { %v883_v57 = vpop.f32.mrf.mxu0  ;;  %904 = vmatmul.mubr.msk.f32.gmra.mxu1 %vm484_vm3, %v466_v53 }
  0xf5   : > { %v467_v58 = vmax.f32 %v421_v56, 0.0  ;;  %v436_v60 = vadd.f32 %v883_v57, %v764_v28 }
  0xf6   : > { %v430_v61 = vpop.f32.mrf.mxu0 }
  0xf7   : > { %v431_v62 = vadd.f32 %v764_v28, %v430_v61  ;;  %906 = vmatprep.mubr.msk.f32.mxu1 %vm484_vm3, %v467_v58  ;;  %v470_v1 = vmax.f32 %v436_v60, 0.0 }
  0xf8   : > { %v886_v63 = vpop.f32.mrf.mxu0  ;;  %907 = vmatmul.mubr.msk.f32.gmra.mxu1 %vm484_vm3, %v468_v59 }
  0xf9   : > { %v469_v0 = vmax.f32 %v431_v62, 0.0  ;;  %v446_v2 = vadd.f32 %v886_v63, %v764_v28 }
  0xfa   : > { %v440_v3 = vpop.f32.mrf.mxu0 }
  0xfb   : > { %v441_v4 = vadd.f32 %v764_v28, %v440_v3  ;;  %909 = vmatprep.mubr.msk.f32.mxu1 %vm484_vm3, %v469_v0  ;;  %v472_v7 = vmax.f32 %v446_v2, 0.0 }
  0xfc   : > { %v889_v5 = vpop.f32.mrf.mxu0  ;;  %910 = vmatmul.mubr.msk.f32.gmra.mxu1 %vm484_vm3, %v470_v1 }
  0xfd   : > { %v471_v6 = vmax.f32 %v441_v4, 0.0  ;;  %v456_v8 = vadd.f32 %v889_v5, %v764_v28 }
  0xfe   : > { %v450_v9 = vpop.f32.mrf.mxu0 }
  0xff   : > { %v451_v10 = vadd.f32 %v764_v28, %v450_v9  ;;  %912 = vmatprep.mubr.msk.f32.mxu1 %vm484_vm3, %v471_v6  ;;  %v474_v12 = vmax.f32 %v456_v8, 0.0 }
 0x100   : > { %913 = vmatmul.mubr.msk.f32.gmra.mxu1 %vm484_vm3, %v472_v7 }
 0x101   : > { %v473_v11 = vmax.f32 %v451_v10, 0.0 }
 0x103   : > { %915 = vmatprep.mubr.msk.f32.mxu1 %vm484_vm3, %v473_v11 }
 0x104   : > { %916 = vmatmul.mubr.msk.f32.gmra.mxu1 %vm484_vm3, %v474_v12 }
 0x1a8   : > { %v896_v14 = vpop.f32.mrf.mxu1 }
 0x1a9   : > { %v609_v15 = vadd.f32 %v896_v14, %v782_v13 }
 0x1aa   : > { %v603_v16 = vpop.f32.mrf.mxu1 }
 0x1ab   : > { %684 = vst.msk [vmem:[%s1077_s8 + $0x8] sm:$0xff] %vm682_vm4, %v609_v15  ;;  %v604_v17 = vadd.f32 %v782_v13, %v603_v16 }
 0x1ac   : > { %v899_v18 = vpop.f32.mrf.mxu1 }
 0x1ad   : > { %683 = vst.msk [vmem:[%s1077_s8] sm:$0xff] %vm682_vm4, %v604_v17  ;;  %v619_v19 = vadd.f32 %v899_v18, %v782_v13 }
 0x1ae   : > { %v613_v20 = vpop.f32.mrf.mxu1 }
 0x1af   : > { %686 = vst.msk [vmem:[%s1077_s8 + $0x18] sm:$0xff] %vm682_vm4, %v619_v19  ;;  %v614_v21 = vadd.f32 %v782_v13, %v613_v20 }
 0x1b0   : > { %v902_v22 = vpop.f32.mrf.mxu1 }
 0x1b1   : > { %685 = vst.msk [vmem:[%s1077_s8 + $0x10] sm:$0xff] %vm682_vm4, %v614_v21  ;;  %v629_v23 = vadd.f32 %v902_v22, %v782_v13 }
 0x1b2   : > { %v623_v24 = vpop.f32.mrf.mxu1 }
 0x1b3   : > { %688 = vst.msk [vmem:[%s1077_s8 + $0x28] sm:$0xff] %vm682_vm4, %v629_v23  ;;  %v624_v25 = vadd.f32 %v782_v13, %v623_v24 }
 0x1b4   : > { %v905_v26 = vpop.f32.mrf.mxu1 }
 0x1b5   : > { %687 = vst.msk [vmem:[%s1077_s8 + $0x20] sm:$0xff] %vm682_vm4, %v624_v25  ;;  %v639_v27 = vadd.f32 %v905_v26, %v782_v13 }
 0x1b6   : > { %v633_v28 = vpop.f32.mrf.mxu1 }
 0x1b7   : > { %690 = vst.msk [vmem:[%s1077_s8 + $0x38] sm:$0xff] %vm682_vm4, %v639_v27  ;;  %v634_v29 = vadd.f32 %v782_v13, %v633_v28 }
 0x1b8   : > { %v908_v30 = vpop.f32.mrf.mxu1 }
 0x1b9   : > { %689 = vst.msk [vmem:[%s1077_s8 + $0x30] sm:$0xff] %vm682_vm4, %v634_v29  ;;  %v649_v31 = vadd.f32 %v908_v30, %v782_v13 }
 0x1ba   : > { %v643_v32 = vpop.f32.mrf.mxu1 }
 0x1bb   : > { %692 = vst.msk [vmem:[%s1077_s8 + $0x48] sm:$0xff] %vm682_vm4, %v649_v31  ;;  %v644_v33 = vadd.f32 %v782_v13, %v643_v32 }
 0x1bc   : > { %v911_v34 = vpop.f32.mrf.mxu1 }
 0x1bd   : > { %691 = vst.msk [vmem:[%s1077_s8 + $0x40] sm:$0xff] %vm682_vm4, %v644_v33  ;;  %v659_v35 = vadd.f32 %v911_v34, %v782_v13 }
 0x1be   : > { %v653_v36 = vpop.f32.mrf.mxu1 }
 0x1bf   : > { %694 = vst.msk [vmem:[%s1077_s8 + $0x58] sm:$0xff] %vm682_vm4, %v659_v35  ;;  %v654_v37 = vadd.f32 %v782_v13, %v653_v36 }
 0x1c0   : > { %v914_v38 = vpop.f32.mrf.mxu1 }
 0x1c1   : > { %693 = vst.msk [vmem:[%s1077_s8 + $0x50] sm:$0xff] %vm682_vm4, %v654_v37  ;;  %v669_v39 = vadd.f32 %v914_v38, %v782_v13 }
 0x1c2   : > { %v663_v40 = vpop.f32.mrf.mxu1 }
 0x1c3   : > { %696 = vst.msk [vmem:[%s1077_s8 + $0x68] sm:$0xff] %vm682_vm4, %v669_v39  ;;  %v664_v41 = vadd.f32 %v782_v13, %v663_v40 }
 0x1c4   : > { %v917_v42 = vpop.f32.mrf.mxu1 }
 0x1c5   : > { %695 = vst.msk [vmem:[%s1077_s8 + $0x60] sm:$0xff] %vm682_vm4, %v664_v41  ;;  %v679_v43 = vadd.f32 %v917_v42, %v782_v13 }
 0x1c6   : > { %v673_v44 = vpop.f32.mrf.mxu1 }
 0x1c7   : > { %698 = vst.msk [vmem:[%s1077_s8 + $0x78] sm:$0xff] %vm682_vm4, %v679_v43  ;;  %v674_v45 = vadd.f32 %v782_v13, %v673_v44 }
 0x1c9   : > { %697 = vst.msk [vmem:[%s1077_s8 + $0x70] sm:$0xff] %vm682_vm4, %v674_v45 }
 0x1ca PF: > { %s15_s18 = sadd.s32 1, %s932_s18  }
 0x1cb   : > { %p12_p4 = scmp.ge.s32.totalorder %s15_s18, 5  }
 0x1cd   :  { %14 = sbr.rel (!%p12_p4) target bundleno = 1 (0x1), region = 70 }

</bundles_post_ra>
